<compile_context>
chip_gen: v5e
topology: v5e:2x2
jax: 0.10.0
libtpu: 0.0.40
codegen_flags: <defaults>
</compile_context>

<pallas_src>
import jax
import jax.numpy as jnp
from jax import lax
from jax.experimental import pallas as pl
from jax.experimental.pallas import tpu as pltpu


def _sdpa_kernel(q_ref, wq_ref, bq_ref, k_ref, wk_ref, bk_ref, v_ref,
                 out_ref, attn_ref):
    # Q projection for this query tile: (TQ, D) x (D, D)^T -> (TQ, D)
    q_proj = lax.dot_general(
        q_ref[...], wq_ref[...],
        dimension_numbers=(((1,), (1,)), ((), ())),
        preferred_element_type=jnp.float32) + bq_ref[...]

    # K projection (full key; recomputed per tile — cheap, and keeps the grid
    # axis embarrassingly parallel so it can shard across TensorCores).
    k_proj = lax.dot_general(
        k_ref[...], wk_ref[...],
        dimension_numbers=(((1,), (1,)), ((), ())),
        preferred_element_type=jnp.float32) + bk_ref[...]

    # sim = Q @ K^T  (contract on the feature dim of both -> MXU handles the
    # "transposed" operand for free; no explicit transpose materialized).
    sim = lax.dot_general(
        q_proj, k_proj,
        dimension_numbers=(((1,), (1,)), ((), ())),
        preferred_element_type=jnp.float32)

    # Row-wise numerically-stable softmax.
    m = jnp.max(sim, axis=-1, keepdims=True)
    e = jnp.exp(sim - m)
    denom = jnp.sum(e, axis=-1, keepdims=True)
    w = e / denom

    attn_ref[...] = w.astype(attn_ref.dtype)

    # attn_output = attn_weights @ V
    out = jnp.dot(w.astype(v_ref.dtype), v_ref[...],
                  preferred_element_type=jnp.float32)
    out_ref[...] = out.astype(out_ref.dtype)


def scaled_dot_product_attention(query, key, value, wq, bq, wk, bk, *, tq=None):
    """Matches ScaledDotProductAttention.forward for 2-D inputs.

    query: (Sq, D)   key: (Sk, D)   value: (Sk, Dv)
    wq, wk: (D, D) in torch (out_features, in_features) layout
    bq, bk: (D,)
    Returns (attn_output (Sq, Dv), attn_weights (Sq, Sk)).
    """
    Sq, D = query.shape
    Sk, Dk = key.shape
    Dv = value.shape[1]
    assert Dk == D and wq.shape == (D, D) and wk.shape == (D, D)
    assert value.shape[0] == Sk

    # Pick the largest MXU/sublane-friendly query tile that divides Sq.
    if tq is None:
        tq = Sq
        for cand in (256, 128, 64, 32, 16, 8):
            if Sq % cand == 0:
                tq = cand
                break
    n_tiles = Sq // tq

    bq2d = bq.reshape(1, D)   # cheap metadata reshape (no HBM copy)
    bk2d = bk.reshape(1, D)

    itemsize = jnp.dtype(query.dtype).itemsize
    flops = (2 * Sq * D * D                 # Q projection
             + 2 * n_tiles * Sk * D * D     # K projection (per tile)
             + 2 * Sq * Sk * D              # Q @ K^T
             + 2 * Sq * Sk * Dv)            # attn @ V
    bytes_accessed = itemsize * (query.size + key.size + value.size
                                 + wq.size + wk.size + bq.size + bk.size
                                 + Sq * Dv + Sq * Sk)

    out_shape = (jax.ShapeDtypeStruct((Sq, Dv), value.dtype),
                 jax.ShapeDtypeStruct((Sq, Sk), jnp.float32))

    return pl.pallas_call(
        _sdpa_kernel,
        out_shape=out_shape,
        grid_spec=pltpu.PrefetchScalarGridSpec(
            num_scalar_prefetch=0,
            grid=(n_tiles,),
            in_specs=[
                pl.BlockSpec((tq, D), lambda i: (i, 0)),    # query tile (pipelined)
                pl.BlockSpec((D, D), lambda i: (0, 0)),     # Wq (resident, torch layout)
                pl.BlockSpec((1, D), lambda i: (0, 0)),     # bq
                pl.BlockSpec((Sk, D), lambda i: (0, 0)),    # key (resident)
                pl.BlockSpec((D, D), lambda i: (0, 0)),     # Wk
                pl.BlockSpec((1, D), lambda i: (0, 0)),     # bk
                pl.BlockSpec((Sk, Dv), lambda i: (0, 0)),   # value (resident)
            ],
            out_specs=[
                pl.BlockSpec((tq, Dv), lambda i: (i, 0)),   # attn_output
                pl.BlockSpec((tq, Sk), lambda i: (i, 0)),   # attn_weights
            ],
        ),
        compiler_params=pltpu.CompilerParams(
            dimension_semantics=("parallel",),              # query tiles are independent
        ),
        cost_estimate=pl.CostEstimate(
            flops=int(flops),
            transcendentals=int(Sq * Sk),
            bytes_accessed=int(bytes_accessed),
        ),
    )(query, wq, bq2d, key, wk, bk2d, value)


if __name__ == "__main__":
    # Small shapes implied by the module: seq_q = seq_k = 16, d_input = 32.
    Sq, Sk, D = 16, 16, 32

    root = jax.random.PRNGKey(0)
    kq, kk, kv, kwq, kbq, kwk, kbk = jax.random.split(root, 7)

    query = jax.random.normal(kq, (Sq, D), dtype=jnp.float32)
    key_in = jax.random.normal(kk, (Sk, D), dtype=jnp.float32)
    value = jax.random.normal(kv, (Sk, D), dtype=jnp.float32)

    # Deterministic params mimicking nn.Linear's uniform(-1/sqrt(D), 1/sqrt(D)).
    bound = 1.0 / (D ** 0.5)
    wq = jax.random.uniform(kwq, (D, D), minval=-bound, maxval=bound, dtype=jnp.float32)
    bq = jax.random.uniform(kbq, (D,), minval=-bound, maxval=bound, dtype=jnp.float32)
    wk = jax.random.uniform(kwk, (D, D), minval=-bound, maxval=bound, dtype=jnp.float32)
    bk = jax.random.uniform(kbk, (D,), minval=-bound, maxval=bound, dtype=jnp.float32)

    attn_out, attn_w = scaled_dot_product_attention(query, key_in, value, wq, bq, wk, bk)
    jax.block_until_ready((attn_out, attn_w))

    # Plain-JAX reference of the torch forward (no 1/sqrt(d) scaling, matching the module).
    Q = query @ wq.T + bq
    K = key_in @ wk.T + bk
    sim = Q @ K.T
    w_ref = jax.nn.softmax(sim, axis=-1)
    out_ref = w_ref @ value

    assert attn_out.shape == (Sq, D) and attn_w.shape == (Sq, Sk)
    assert jnp.allclose(attn_w, w_ref, atol=1e-5, rtol=1e-5)
    assert jnp.allclose(attn_out, out_ref, atol=1e-5, rtol=1e-5)

    print("KERNEL_OK")
</pallas_src>

<mosaic_0001>
module attributes {stable_mosaic.version = 11 : i64} {
  func.func @_sdpa_kernel(%arg0: i32, %arg1: memref<16x32xf32, #tpu.memory_space<vmem>>, %arg2: memref<32x32xf32, #tpu.memory_space<vmem>>, %arg3: memref<1x32xf32, #tpu.memory_space<vmem>>, %arg4: memref<16x32xf32, #tpu.memory_space<vmem>>, %arg5: memref<32x32xf32, #tpu.memory_space<vmem>>, %arg6: memref<1x32xf32, #tpu.memory_space<vmem>>, %arg7: memref<16x32xf32, #tpu.memory_space<vmem>>, %arg8: memref<16x32xf32, #tpu.memory_space<vmem>>, %arg9: memref<16x16xf32, #tpu.memory_space<vmem>>) attributes {dimension_semantics = [#tpu.dimension_semantics<parallel>], iteration_bounds = array<i64: 1>, scalar_prefetch = 0 : i64, scratch_operands = 0 : i64, tpu.core_type = #tpu.core_type<tc>, window_params = [{transform_indices = @transform_0, window_bounds = array<i64: 16, 32>}, {pipeline_mode = #tpu.pipeline_mode<synchronous>, transform_indices = @transform_1, window_bounds = array<i64: 32, 32>}, {pipeline_mode = #tpu.pipeline_mode<synchronous>, transform_indices = @transform_2, window_bounds = array<i64: 1, 32>}, {pipeline_mode = #tpu.pipeline_mode<synchronous>, transform_indices = @transform_3, window_bounds = array<i64: 16, 32>}, {pipeline_mode = #tpu.pipeline_mode<synchronous>, transform_indices = @transform_4, window_bounds = array<i64: 32, 32>}, {pipeline_mode = #tpu.pipeline_mode<synchronous>, transform_indices = @transform_5, window_bounds = array<i64: 1, 32>}, {pipeline_mode = #tpu.pipeline_mode<synchronous>, transform_indices = @transform_6, window_bounds = array<i64: 16, 32>}, {transform_indices = @transform_7, window_bounds = array<i64: 16, 32>}, {transform_indices = @transform_8, window_bounds = array<i64: 16, 16>}]} {
    %c0 = arith.constant 0 : index
    %c0_0 = arith.constant 0 : index
    %0 = vector.load %arg1[%c0, %c0_0] : memref<16x32xf32, #tpu.memory_space<vmem>>, vector<16x32xf32>
    %c0_1 = arith.constant 0 : index
    %c0_2 = arith.constant 0 : index
    %1 = vector.load %arg2[%c0_1, %c0_2] : memref<32x32xf32, #tpu.memory_space<vmem>>, vector<32x32xf32>
    %cst = arith.constant dense<0.000000e+00> : vector<16x32xf32>
    %2 = tpu.matmul %0, %1, %cst {dimension_numbers = #tpu.dot_dimension_numbers<[1], [1], [0], [0], [0, 0, 1, 0], [], []>} : vector<16x32xf32>, vector<32x32xf32>, vector<16x32xf32> -> vector<16x32xf32>
    %c0_3 = arith.constant 0 : index
    %c0_4 = arith.constant 0 : index
    %3 = vector.load %arg3[%c0_3, %c0_4] : memref<1x32xf32, #tpu.memory_space<vmem>>, vector<1x32xf32>
    %4 = vector.broadcast %3 : vector<1x32xf32> to vector<16x32xf32>
    %5 = arith.addf %2, %4 : vector<16x32xf32>
    %c0_5 = arith.constant 0 : index
    %c0_6 = arith.constant 0 : index
    %6 = vector.load %arg4[%c0_5, %c0_6] : memref<16x32xf32, #tpu.memory_space<vmem>>, vector<16x32xf32>
    %c0_7 = arith.constant 0 : index
    %c0_8 = arith.constant 0 : index
    %7 = vector.load %arg5[%c0_7, %c0_8] : memref<32x32xf32, #tpu.memory_space<vmem>>, vector<32x32xf32>
    %cst_9 = arith.constant dense<0.000000e+00> : vector<16x32xf32>
    %8 = tpu.matmul %6, %7, %cst_9 {dimension_numbers = #tpu.dot_dimension_numbers<[1], [1], [0], [0], [0, 0, 1, 0], [], []>} : vector<16x32xf32>, vector<32x32xf32>, vector<16x32xf32> -> vector<16x32xf32>
    %c0_10 = arith.constant 0 : index
    %c0_11 = arith.constant 0 : index
    %9 = vector.load %arg6[%c0_10, %c0_11] : memref<1x32xf32, #tpu.memory_space<vmem>>, vector<1x32xf32>
    %10 = vector.broadcast %9 : vector<1x32xf32> to vector<16x32xf32>
    %11 = arith.addf %8, %10 : vector<16x32xf32>
    %cst_12 = arith.constant dense<0.000000e+00> : vector<16x16xf32>
    %12 = tpu.matmul %5, %11, %cst_12 {dimension_numbers = #tpu.dot_dimension_numbers<[1], [1], [0], [0], [0, 0, 1, 0], [], []>} : vector<16x32xf32>, vector<16x32xf32>, vector<16x16xf32> -> vector<16x16xf32>
    %cst_13 = arith.constant dense<0xFF800000> : vector<16xf32>
    %13 = vector.multi_reduction <maximumf>, %12, %cst_13 [1] : vector<16x16xf32> to vector<16xf32>
    %14 = vector.shape_cast %13 : vector<16xf32> to vector<16x1xf32>
    %15 = vector.broadcast %14 : vector<16x1xf32> to vector<16x16xf32>
    %16 = arith.subf %12, %15 : vector<16x16xf32>
    %17 = math.exp %16 : vector<16x16xf32>
    %cst_14 = arith.constant dense<0.000000e+00> : vector<16xf32>
    %18 = vector.multi_reduction <add>, %17, %cst_14 [1] : vector<16x16xf32> to vector<16xf32>
    %19 = vector.shape_cast %18 : vector<16xf32> to vector<16x1xf32>
    %20 = vector.broadcast %19 : vector<16x1xf32> to vector<16x16xf32>
    %21 = arith.divf %17, %20 : vector<16x16xf32>
    %c0_15 = arith.constant 0 : index
    %c0_16 = arith.constant 0 : index
    %22 = vector.load %arg9[%c0_15, %c0_16] : memref<16x16xf32, #tpu.memory_space<vmem>>, vector<16x16xf32>
    tpu.vector_store %arg9[%c0_15, %c0_16], %21 {strides = array<i32>} : memref<16x16xf32, #tpu.memory_space<vmem>>, vector<16x16xf32>,
    %c0_17 = arith.constant 0 : index
    %c0_18 = arith.constant 0 : index
    %23 = vector.load %arg7[%c0_17, %c0_18] : memref<16x32xf32, #tpu.memory_space<vmem>>, vector<16x32xf32>
    %cst_19 = arith.constant dense<0.000000e+00> : vector<16x32xf32>
    %24 = tpu.matmul %21, %23, %cst_19 {dimension_numbers = #tpu.dot_dimension_numbers<[1], [0], [0], [1], [0, 0, 1, 1], [], []>} : vector<16x16xf32>, vector<16x32xf32>, vector<16x32xf32> -> vector<16x32xf32>
    %c0_20 = arith.constant 0 : index
    %c0_21 = arith.constant 0 : index
    %25 = vector.load %arg8[%c0_20, %c0_21] : memref<16x32xf32, #tpu.memory_space<vmem>>, vector<16x32xf32>
    tpu.vector_store %arg8[%c0_20, %c0_21], %24 {strides = array<i32>} : memref<16x32xf32, #tpu.memory_space<vmem>>, vector<16x32xf32>,
    return
  }
  func.func @transform_0(%arg0: i32) -> (i32, i32) {
    %c0_i32 = arith.constant 0 : i32
    %c0_i32_0 = arith.constant 0 : i32
    return %arg0, %c0_i32 : i32, i32
  }
  func.func @transform_1(%arg0: i32) -> (i32, i32) {
    %c0_i32 = arith.constant 0 : i32
    %c0_i32_0 = arith.constant 0 : i32
    %c0_i32_1 = arith.constant 0 : i32
    return %c0_i32, %c0_i32_0 : i32, i32
  }
  func.func @transform_2(%arg0: i32) -> (i32, i32) {
    %c0_i32 = arith.constant 0 : i32
    %c0_i32_0 = arith.constant 0 : i32
    %c0_i32_1 = arith.constant 0 : i32
    return %c0_i32, %c0_i32_0 : i32, i32
  }
  func.func @transform_3(%arg0: i32) -> (i32, i32) {
    %c0_i32 = arith.constant 0 : i32
    %c0_i32_0 = arith.constant 0 : i32
    %c0_i32_1 = arith.constant 0 : i32
    return %c0_i32, %c0_i32_0 : i32, i32
  }
  func.func @transform_4(%arg0: i32) -> (i32, i32) {
    %c0_i32 = arith.constant 0 : i32
    %c0_i32_0 = arith.constant 0 : i32
    %c0_i32_1 = arith.constant 0 : i32
    return %c0_i32, %c0_i32_0 : i32, i32
  }
  func.func @transform_5(%arg0: i32) -> (i32, i32) {
    %c0_i32 = arith.constant 0 : i32
    %c0_i32_0 = arith.constant 0 : i32
    %c0_i32_1 = arith.constant 0 : i32
    return %c0_i32, %c0_i32_0 : i32, i32
  }
  func.func @transform_6(%arg0: i32) -> (i32, i32) {
    %c0_i32 = arith.constant 0 : i32
    %c0_i32_0 = arith.constant 0 : i32
    %c0_i32_1 = arith.constant 0 : i32
    return %c0_i32, %c0_i32_0 : i32, i32
  }
  func.func @transform_7(%arg0: i32) -> (i32, i32) {
    %c0_i32 = arith.constant 0 : i32
    %c0_i32_0 = arith.constant 0 : i32
    return %arg0, %c0_i32 : i32, i32
  }
  func.func @transform_8(%arg0: i32) -> (i32, i32) {
    %c0_i32 = arith.constant 0 : i32
    %c0_i32_0 = arith.constant 0 : i32
    return %arg0, %c0_i32 : i32, i32
  }
}

</mosaic_0001>

<bundles_post_ra>
// kernel: tpu_custom_call.1
= control target key start
LH: loop header
LB: loop body
LE: loop exit
PB: predicated region body
PF: predicated region fallthrough
CT: control target
= control target key end

     0   :  { %14 = vsyncpa [#allocation3], 0  ;;  %s712_s0 = inlined_call_operand.hbm [shape: f32[16,32], index: 0, kind: input, shape index: {}]   ;;  %s713_s1 = inlined_call_operand.hbm [shape: f32[32,32], index: 1, kind: input, shape index: {}]   ;;  %s714_s2 = inlined_call_operand.vmem [shape: f32[1,32], index: 2, kind: input, shape index: {}]   ;;  %s715_s3 = inlined_call_operand.hbm [shape: f32[16,32], index: 3, kind: input, shape index: {}]   ;;  %s716_s4 = inlined_call_operand.hbm [shape: f32[32,32], index: 4, kind: input, shape index: {}]   ;;  %s717_s5 = inlined_call_operand.vmem [shape: f32[1,32], index: 5, kind: input, shape index: {}]   ;;  %s718_s6 = inlined_call_operand.hbm [shape: f32[16,32], index: 6, kind: input, shape index: {}]   ;;  %s719_s7 = inlined_call_operand.hbm [shape: f32[16,32], index: 7, kind: output, shape index: {0}]   ;;  %s720_s8 = inlined_call_operand.hbm [shape: f32[16,16], index: 8, kind: output, shape index: {1}]  }
   0x1   :  { %15 = vsyncpa [#allocation6], 0 }
   0x2   :  { %16 = vsyncpa [#allocation9], 0 }
   0x3   :  { %17 = vsyncpa [#allocation4], 0 }
   0x4   :  { %18 = vsyncpa [#allocation13], 0  ;;  %s36_s29 = sshll.u32 %s713_s1, 4  ;;  %s584_s30 = smov [#allocation5]   ;;  %s37_s29 = int_to_ptr.hbm [resolvable:$true] %s36_s29 }
   0x5   :  { %s38_s9 = sshll.u32 %s584_s30, 4  ;;  %s64_s12 = sshll.u32 %s716_s4, 4  ;;  %s39_s9 = int_to_ptr.vmem [resolvable:$true] %s38_s9  ;;  %s65_s12 = int_to_ptr.hbm [resolvable:$true] %s64_s12 }
   0x6   :  { %s585_s13 = smov 128   ;;  %s586_s14 = smov 8  }
   0x7   :  { %44 = dma.hbm_to_vmem [thread:$0]  %s37_s29, 512, %s39_s9, [#allocation6], %s585_s13, %s585_s13, %s586_s14  }
   0x8   :  { %s587_s15 = smov [#allocation8]   ;;  %s23_s1 = sshll.u32 %s712_s0, 4  ;;  %s24_s1 = int_to_ptr.hbm [resolvable:$true] %s23_s1 }
   0x9   :  { %s66_s16 = sshll.u32 %s587_s15, 4  ;;  %s51_s20 = sshll.u32 %s715_s3, 4  ;;  %s67_s16 = int_to_ptr.vmem [resolvable:$true] %s66_s16  ;;  %s52_s20 = int_to_ptr.hbm [resolvable:$true] %s51_s20 }
   0xa   :  { %72 = dma.hbm_to_vmem [thread:$0]  %s65_s12, 512, %s67_s16, [#allocation9], %s585_s13, %s585_s13, %s586_s14  }
   0xb   :  { %s588_s21 = smov [#allocation2]   ;;  %s589_s23 = smov [#allocation7]  }
   0xc   :  { %s25_s22 = sshll.u32 %s588_s21, 4  ;;  %s53_s0 = sshll.u32 %s589_s23, 4  ;;  %s26_s22 = int_to_ptr.vmem [resolvable:$true] %s25_s22  ;;  %s54_s0 = int_to_ptr.vmem [resolvable:$true] %s53_s0 }
   0xd   :  { %31 = dma.hbm_to_vmem [thread:$0]  %s24_s1, 256, %s26_s22, [#allocation3], %s585_s13, %s585_s13, %s586_s14  }
   0xe   :  { %s79_s26 = sshll.u32 %s718_s6, 4  ;;  %s590_s3 = smov [#allocation10]   ;;  %s80_s26 = int_to_ptr.hbm [resolvable:$true] %s79_s26 }
   0xf   :  { %59 = dma.hbm_to_vmem [thread:$0]  %s52_s20, 256, %s54_s0, [#allocation6], %s585_s13, %s585_s13, %s586_s14  }
  0x10   :  { %s81_s27 = sshll.u32 %s590_s3, 4  ;;  %s82_s27 = int_to_ptr.vmem [resolvable:$true] %s81_s27 }
  0x11   :  { %87 = dma.hbm_to_vmem [thread:$0]  %s80_s26, 256, %s82_s27, [#allocation9], %s585_s13, %s585_s13, %s586_s14  }
  0x12   :  { %574 = dma.done.wait [#allocation3], 256  }
  0x13   :  { %575 = vsyncadd [#allocation3], 4294967040 }
  0x14   :  { %576 = dma.done.wait [#allocation6], 768  }
  0x15   :  { %577 = vsyncadd [#allocation6], 4294966528 }
  0x16   :  { %578 = dma.done.wait [#allocation9], 768  }
  0x17   :  { %579 = vsyncadd [#allocation9], 4294966528  ;;  %vm118_vm0 = vcmask 261120   ;;  %v165_v0 = vld [vmem:[#allocation8 + $0x18] sm:$0xff]  ;;  %v113_v1 = vld [vmem:[#allocation5 + $0x18] sm:$0xff]  ;;  %vm246_vm1 = vcmask 130048  }
  0x18   :  { %375 = vmatpush.xpose.msk.msra.mxu1 %vm118_vm0, %v165_v0  ;;  %v164_v2 = vld [vmem:[#allocation8 + $0x10] sm:$0xff]  ;;  %369 = vmatpush.xpose.msk.msra.mxu0 %vm118_vm0, %v113_v1  ;;  %v112_v3 = vld [vmem:[#allocation5 + $0x10] sm:$0xff]  ;;  %v163_v4 = vld [vmem:[#allocation8 + $0x8] sm:$0xff]  ;;  %s349_s11 = sshll.u32 %s720_s8, 4  ;;  %s592_s12 = smov [#allocation11]   ;;  %s350_s11 = int_to_ptr.hbm [resolvable:$true] %s349_s11 }
  0x19   :  { %v111_v5 = vld [vmem:[#allocation5 + $0x8] sm:$0xff]  ;;  %v162_v6 = vld [vmem:[#allocation8] sm:$0xff]  ;;  %v110_v7 = vld [vmem:[#allocation5] sm:$0xff]  ;;  %s334_s15 = sshll.u32 %s592_s12, 4  ;;  %s336_s18 = sshll.u32 %s719_s7, 4  ;;  %s335_s15 = int_to_ptr.vmem [resolvable:$true] %s334_s15  ;;  %s337_s18 = int_to_ptr.hbm [resolvable:$true] %s336_s18 }
  0x1a   :  { %v160_v8 = vld [vmem:[#allocation7] sm:$0xff]  ;;  %v108_v9 = vld [vmem:[#allocation2] sm:$0xff]  ;;  %v161_v10 = vld [vmem:[#allocation7 + $0x8] sm:$0xff] }
  0x1b   :  { %v109_v11 = vld [vmem:[#allocation2 + $0x8] sm:$0xff]  ;;  %v396_v13 = vld [vmem:[%s717_s5] ss:$0 sm:$0xff] }
  0x1c   :  { %376 = vmatpush.xpose.msk.msra.mxu1 %vm118_vm0, %v164_v2  ;;  %370 = vmatpush.xpose.msk.msra.mxu0 %vm118_vm0, %v112_v3  ;;  %v397_v17 = vld [vmem:[%s714_s2] ss:$0 sm:$0xff]  ;;  %v298_v36 = vld [vmem:[#allocation10 + $0x8] sm:$0xff]  ;;  %s591_s2 = smov [#allocation12]  }
  0x1d   :  { %319 = vmatpush.msra.mxu3 %v298_v36  ;;  %v297_v37 = vld [vmem:[#allocation10] sm:$0xff]  ;;  %s347_s5 = sshll.u32 %s591_s2, 4  ;;  %s348_s5 = int_to_ptr.vmem [resolvable:$true] %s347_s5 }
  0x1f   :  { %320 = vmatpush.msra.mxu3 %v297_v37 }
  0x20   :  { %377 = vmatpush.xpose.msk.msra.mxu1 %vm118_vm0, %v163_v4  ;;  %371 = vmatpush.xpose.msk.msra.mxu0 %vm118_vm0, %v111_v5 }
  0x24   :  { %378 = vmatpush.xpose.msk.msra.mxu1 %vm118_vm0, %v162_v6  ;;  %372 = vmatpush.xpose.msk.msra.mxu0 %vm118_vm0, %v110_v7 }
  0x27   :  { %379 = vmatmul.msk.f32.vlgmr.msra.gmra.mxu1 %vm118_vm0, %v160_v8  ;;  %373 = vmatmul.msk.f32.vlgmr.msra.gmra.mxu0 %vm118_vm0, %v108_v9 }
  0x2f   :  { %380 = vmatmul.msk.f32.gmra.mxu1 %vm118_vm0, %v161_v10  ;;  %374 = vmatmul.msk.f32.gmra.mxu0 %vm118_vm0, %v109_v11 }
  0xa4   :  { %v205_v12 = vpop.f32.mrf.mxu1  ;;  %v154_v16 = vpop.f32.mrf.mxu0 }
  0xa5   :  { %v206_v18 = vadd.f32 %v396_v13, %v205_v12  ;;  %v155_v19 = vadd.f32 %v397_v17, %v154_v16 }
  0xac   :  { %v208_v14 = vpop.f32.mrf.mxu1  ;;  %v157_v20 = vpop.f32.mrf.mxu0 }
  0xad   :  { %v209_v15 = vadd.f32 %v396_v13, %v208_v14  ;;  %v158_v21 = vadd.f32 %v397_v17, %v157_v20 }
  0xaf   :  { %381 = vmatpush.xpose.msk.msra.mxu2 %vm118_vm0, %v209_v15 }
  0xb3   :  { %382 = vmatpush.xpose.msk.msra.mxu2 %vm118_vm0, %v206_v18 }
  0xb6   :  { %383 = vmatmul.msk.f32.vlgmr.msra.gmra.mxu2 %vm118_vm0, %v155_v19 }
  0xbe   :  { %384 = vmatmul.msk.f32.gmra.mxu2 %vm118_vm0, %v158_v21 }
 0x139   :  { %v240_v22 = vpop.f32.mrf.mxu2 }
 0x13a   :  { %v247_v23 = vsel %vm246_vm1, %v240_v22, -inf }
 0x13b   :  { %248 = vmax.xlane.f32.xlu0 %v247_v23 }
 0x141   :  { %v243_v24 = vpop.f32.mrf.mxu2 }
 0x142   :  { %v250_v25 = vsel %vm246_vm1, %v243_v24, -inf }
 0x143   :  { %251 = vmax.xlane.f32.xlu0 %v250_v25 }
 0x1ae   :  { %v249_v26 = vpop.xlane.xlu0 %248 }
 0x1af   :  { %v253_v27 = vsub.f32 %v240_v22, %v249_v26 }
 0x1b1   :  { %v255_v28 = vmul.f32 1.442695, %v253_v27 }
 0x1b3   :  { %398 = vpow2.f32 %v255_v28 }
 0x1b6   :  { %v252_v29 = vpop.xlane.xlu0 %251 }
 0x1b7   :  { %v254_v30 = vsub.f32 %v243_v24, %v252_v29 }
 0x1b9   :  { %v399_v31 = vpop.eup %398  ;;  %v257_v32 = vmul.f32 1.442695, %v254_v30 }
 0x1ba   :  { %v259_v33 = vsel %vm246_vm1, %v399_v31, 0.0 }
 0x1bb   :  { %400 = vpow2.f32 %v257_v32  ;;  %260 = vadd.xlane.f32.xlu1 %v259_v33 }
 0x1c1   :  { %v401_v34 = vpop.eup %400 }
 0x1c2   :  { %v262_v35 = vsel %vm246_vm1, %v401_v34, 0.0 }
 0x1c3   :  { %263 = vadd.xlane.f32.xlu1 %v262_v35 }
 0x22e   :  { %v261_v38 = vpop.xlane.xlu1 %260 }
 0x22f   :  { %402 = vrcp.f32 %v261_v38  ;;  %v276_v43 = vand.u32 2147483648, %v261_v38  ;;  %v274_v45 = vand.u32 2147483647, %v261_v38  ;;  %vm270_vm3 = vweird.f32 %v261_v38 }
 0x231   :  { %v277_v48 = vor.u32 1.1754944e-38, %v276_v43  ;;  %vm275_vm5 = vcmp.eq.f32.partialorder %v274_v45, 8.507059e+37 }
 0x235   :  { %v403_v39 = vpop.eup %402 }
 0x236   :  { %v266_v40 = vmul.f32 %v403_v39, %v261_v38  ;;  %v264_v41 = vpop.xlane.xlu1 %263  ;;  %vm271_vm2 = vweird.f32 %v403_v39 }
 0x237   :  { %404 = vrcp.f32 %v264_v41  ;;  %vm272_vm4 = vmor %vm270_vm3, %vm271_vm2  ;;  %v291_v54 = vand.u32 2147483648, %v264_v41  ;;  %v289_v56 = vand.u32 2147483647, %v264_v41  ;;  %vm285_vm7 = vweird.f32 %v264_v41 }
 0x238   :  { %v267_v42 = vsub.f32 1.0, %v266_v40 }
 0x239   :  { %v292_v58 = vor.u32 1.1754944e-38, %v291_v54  ;;  %vm290_vm9 = vcmp.eq.f32.partialorder %v289_v56, 8.507059e+37 }
 0x23a   :  { %v268_v44 = vmul.f32 %v403_v39, %v267_v42 }
 0x23c   :  { %v269_v46 = vadd.f32 %v403_v39, %v268_v44 }
 0x23d   :  { %v405_v47 = vpop.eup %404 }
 0x23e   :  { %v281_v49 = vmul.f32 %v405_v47, %v264_v41  ;;  %v273_v50 = vsel %vm272_vm4, %v403_v39, %v269_v46  ;;  %vm286_vm6 = vweird.f32 %v405_v47 }
 0x23f   :  { %v278_v51 = vsel %vm275_vm5, %v277_v48, %v273_v50  ;;  %vm287_vm8 = vmor %vm285_vm7, %vm286_vm6 }
 0x240   :  { %v282_v52 = vsub.f32 1.0, %v281_v49  ;;  %v279_v53 = vmul.f32 %v399_v31, %v278_v51 }
 0x242   :  { %v283_v55 = vmul.f32 %v405_v47, %v282_v52  ;;  %385 = vmatmul.msk.f32.vlgmr.msra.gmra.mxu3 %vm246_vm1, %v279_v53  ;;  %295 = vst.msk [vmem:[#allocation12] sm:$0xff] %vm246_vm1, %v279_v53 }
 0x244   :  { %v284_v57 = vadd.f32 %v405_v47, %v283_v55 }
 0x246   :  { %v288_v59 = vsel %vm287_vm8, %v405_v47, %v284_v57 }
 0x247   :  { %v293_v60 = vsel %vm290_vm9, %v292_v58, %v288_v59 }
 0x248   :  { %v294_v61 = vmul.f32 %v401_v34, %v293_v60 }
 0x24a   :  { %386 = vmatmul.msk.f32.gmra.mxu3 %vm246_vm1, %v294_v61  ;;  %296 = vst.msk [vmem:[#allocation12 + $0x8] sm:$0xff] %vm246_vm1, %v294_v61 }
 0x24b   :  { %355 = dma.vmem_to_hbm [thread:$0]  %s348_s5, 256, %s350_s11, [#allocation13], %s585_s13, %s585_s13, %s586_s14  }
 0x2c5   :  { %v322_v62 = vpop.f32.mrf.mxu3 }
 0x2c6   :  { %328 = vst.msk [vmem:[#allocation11] sm:$0xff] %vm118_vm0, %v322_v62 }
 0x2cd   :  { %v325_v63 = vpop.f32.mrf.mxu3 }
 0x2ce   :  { %329 = vst.msk [vmem:[#allocation11 + $0x8] sm:$0xff] %vm118_vm0, %v325_v63 }
 0x2cf   :  { %342 = dma.vmem_to_hbm [thread:$0]  %s335_s15, 256, %s337_s18, [#allocation4], %s585_s13, %s585_s13, %s586_s14  }
 0x2d0   :  { %580 = dma.done.wait [#allocation4], 256  }
 0x2d1   :  { %581 = vsyncadd [#allocation4], 4294967040 }
 0x2d2   :  { %582 = dma.done.wait [#allocation13], 256  }
 0x2d3   :  { %583 = vsyncadd [#allocation13], 4294967040 }
 0x2d4   :  { %364 = vsyncpa [#allocation3], 1 }
 0x2d5   :  { %365 = vsyncpa [#allocation6], 1 }
 0x2d6   :  { %366 = vsyncpa [#allocation9], 1 }
 0x2d7   :  { %367 = vsyncpa [#allocation4], 1 }
 0x2d8   :  { %368 = vsyncpa [#allocation13], 1 }

</bundles_post_ra>
